<compile_context>
chip_gen: v7x
topology: tpu7x:2x2x1
jax: 0.10.0
libtpu: 0.0.40
codegen_flags: <defaults>
</compile_context>

<pallas_src>
import functools
import math

import jax
import jax.numpy as jnp
from jax import lax
from jax.experimental import pallas as pl
from jax.experimental.pallas import tpu as pltpu

_LANE = 128
_MAX_BLOCK_ROWS = 2048          # (2048,128) f32 = 1 MiB per stream per buffer
_EPS = 1e-6
_LOG_EPS = math.log(_EPS)
_LOG_1M_EPS = math.log1p(-_EPS)


def _cb_loss_kernel(o_ref, t_ref, out_ref, *, sigmoid, attention, beta, gamma,
                    n_total, nblocks, spc, brows, has_tail, has_overflow):
    """Accumulates per-lane partials into out_ref[0] = [cnt, sum_b, sum_nb] (each (8,128)):
       cnt    : #nonzero targets
       sum_b  : sum of boundary terms     without the alpha factor
       sum_nb : sum of non-boundary terms without the (1-alpha) factor
    """
    c = pl.program_id(0)   # core-split axis ("parallel")
    i = pl.program_id(1)   # row-block axis ("arbitrary")

    @pl.when(i == 0)
    def _():
        out_ref[...] = jnp.zeros_like(out_ref)

    def accumulate(mask_tail):
        x = o_ref[...]
        t = t_ref[...]

        if sigmoid:
            # Stable log-sigmoid: one exp + one log1p (EUP), rest is VPU.
            #   log(sigmoid(x))     = min(x,0) - log1p(exp(-|x|))
            #   log(1 - sigmoid(x)) = -max(x,0) - log1p(exp(-|x|))
            # clip in log-space == reference's clip(o, eps, 1-eps) before log.
            ea = jnp.exp(-jnp.abs(x))
            lp = jnp.log1p(ea)
            log_o = jnp.clip(jnp.minimum(x, 0.0) - lp, _LOG_EPS, _LOG_1M_EPS)
            log_1mo = jnp.clip(-jnp.maximum(x, 0.0) - lp, _LOG_EPS, _LOG_1M_EPS)
            if attention:
                r = pl.reciprocal(1.0 + ea, approx=False)
                o = jnp.where(x >= 0.0, r, 1.0 - r)       # sigmoid(x), stable
                o = jnp.clip(o, _EPS, 1.0 - _EPS)
        else:
            # sigmoid=False path keeps its own clamp to protect the logs.
            o = jnp.clip(x, _EPS, 1.0 - _EPS)
            log_o = jnp.log(o)
            log_1mo = jnp.log1p(-o)

        if attention:
            ln_beta = math.log(beta)
            if gamma == 0.5:
                pb = jnp.sqrt(1.0 - o)                    # (1-o)**gamma
                pnb = jnp.sqrt(o)                         # o**gamma
            else:
                pb = jnp.exp(gamma * log_1mo)
                pnb = jnp.exp(gamma * log_o)
            fb = jnp.exp(ln_beta * pb)                    # beta ** (1-o)**gamma
            fnb = jnp.exp(ln_beta * pnb)                  # beta ** o**gamma
            term_b = (-t) * fb * log_o
            term_nb = (t - 1.0) * fnb * log_1mo
        else:
            term_b = (-t) * log_o
            term_nb = (t - 1.0) * log_1mo

        nz = (t != 0.0).astype(jnp.float32)

        if mask_tail:
            g = c * spc + i
            row = lax.broadcasted_iota(jnp.int32, (brows, _LANE), 0)
            col = lax.broadcasted_iota(jnp.int32, (brows, _LANE), 1)
            flat = g * (brows * _LANE) + row * _LANE + col
            valid = flat < n_total
            zero = jnp.zeros_like(term_b)
            term_b = jnp.where(valid, term_b, zero)
            term_nb = jnp.where(valid, term_nb, zero)
            nz = jnp.where(valid, nz, zero)

        def rsum(v):
            # (brows,128) -> (brows//8, 8, 128) -> sum over leading axis: VPU adds only.
            return v.reshape(brows // 8, 8, _LANE).sum(axis=0)

        out_ref[0, 0] += rsum(nz)
        out_ref[0, 1] += rsum(term_b)
        out_ref[0, 2] += rsum(term_nb)

    if (not has_tail) and (not has_overflow):
        accumulate(False)
    else:
        g = c * spc + i
        last = nblocks - 1
        if has_tail:
            @pl.when(g < last)
            def _():
                accumulate(False)

            @pl.when(g == last)
            def _():
                accumulate(True)
            # g > last (overflow step when nblocks is odd): contributes nothing.
        else:
            @pl.when(g <= last)
            def _():
                accumulate(False)


def _partial_sums(label_out, label, *, sigmoid, attention, beta, gamma):
    n_total = int(label.size)
    rows = -(-n_total // _LANE)                           # ceil
    brows = min(_MAX_BLOCK_ROWS, ((rows + 7) // 8) * 8)   # block rows, multiple of 8
    nblocks = -(-rows // brows)
    padded_rows = nblocks * brows
    pad = padded_rows * _LANE - n_total

    ncores = 2 if nblocks >= 2 else 1                     # split across v7x TCs
    spc = -(-nblocks // ncores)                           # row-blocks per core
    has_overflow = (ncores * spc != nblocks)
    has_tail = pad > 0

    def prep(x):
        f = x.reshape(-1).astype(jnp.float32)
        if pad:
            f = jnp.pad(f, (0, pad))
        return f.reshape(padded_rows, _LANE)

    o2 = prep(label_out)
    t2 = prep(label)

    def in_idx(c, i):
        g = c * spc + i
        if has_overflow:
            g = jnp.minimum(g, nblocks - 1)               # clamp the overflow step
        return (g, 0)

    kernel = functools.partial(
        _cb_loss_kernel, sigmoid=sigmoid, attention=attention, beta=beta,
        gamma=gamma, n_total=n_total, nblocks=nblocks, spc=spc, brows=brows,
        has_tail=has_tail, has_overflow=has_overflow)

    parts = pl.pallas_call(
        kernel,
        out_shape=jax.ShapeDtypeStruct((ncores, 3, 8, _LANE), jnp.float32),
        grid_spec=pltpu.PrefetchScalarGridSpec(
            num_scalar_prefetch=0,
            grid=(ncores, spc),
            in_specs=[pl.BlockSpec((brows, _LANE), in_idx),
                      pl.BlockSpec((brows, _LANE), in_idx)],
            out_specs=pl.BlockSpec((1, 3, 8, _LANE), lambda c, i: (c, 0, 0, 0)),
        ),
        compiler_params=pltpu.CompilerParams(
            dimension_semantics=("parallel", "arbitrary")),
    )(o2, t2)

    sums = parts.sum(axis=(0, 2, 3))                      # (3,) = [cnt, sum_b, sum_nb]
    return sums[0], sums[1], sums[2], n_total


class ClassBalancedCrossEntropyPallas:
    """alpha = nonzero(targets) / n_total ; loss = sum(alpha*bnd + (1-alpha)*nonbnd)/N"""

    def __call__(self, label_out, label, *, sigmoid=True):
        cnt, sb, snb, n_total = _partial_sums(
            label_out, label, sigmoid=sigmoid, attention=False, beta=1.0, gamma=1.0)
        alpha = cnt / n_total
        loss = alpha * sb + (1.0 - alpha) * snb
        return loss / label_out.shape[0]


class ClassBalancedCrossEntropyAttentionLossPallas:
    """alpha = (n_total - nonzero(targets)) / n_total ; DOOBNet attention loss."""

    def __init__(self, beta=4.0, gamma=0.5):
        self.beta = float(beta)
        self.gamma = float(gamma)

    def __call__(self, label_out, label, *, sigmoid=True):
        cnt, sb, snb, n_total = _partial_sums(
            label_out, label, sigmoid=sigmoid, attention=True,
            beta=self.beta, gamma=self.gamma)
        alpha = (n_total - cnt) / n_total
        loss = alpha * sb + (1.0 - alpha) * snb
        return loss / label_out.shape[0]


class CombinedLossPallas:
    """JAX/Pallas port of CombinedLoss. sparsity / negative-weight loss fcns are
    None by default, so they contribute 0 (matching the PyTorch defaults)."""
    # TODO(synk): sparsity_loss_fcn / negative_weights_loss_fcn are opaque user
    # callables in the PyTorch module; only the default (None -> 0) path is ported.

    def __init__(self, criterion, sigmoid_predictions=False,
                 sparsity_loss_fcn=None, sparsity_loss_weight=0,
                 negative_weights_loss_fcn=None, negative_weights_loss_weight=0):
        self.criterion = criterion
        self.sigmoid_predictions = sigmoid_predictions
        self.sparsity_loss_fcn = sparsity_loss_fcn
        self.sparsity_loss_weight = sparsity_loss_weight
        self.negative_weights_loss_fcn = negative_weights_loss_fcn
        self.negative_weights_loss_weight = negative_weights_loss_weight

    def __call__(self, label_out, label, weight_e=None, weight_i=None):
        # sigmoid is fused into the Pallas kernel instead of applied outside.
        criteria_loss = self.criterion(label_out, label,
                                       sigmoid=self.sigmoid_predictions)
        sparsity_loss = 0.0
        if self.sparsity_loss_fcn is not None:
            sparsity_loss = self.sparsity_loss_weight * self.sparsity_loss_fcn(
                weight_e, weight_i)
        neg_weights_penalty = 0.0
        if self.negative_weights_loss_fcn is not None:
            neg_weights_penalty = (self.negative_weights_loss_weight *
                                   self.negative_weights_loss_fcn(weight_e, weight_i))
        return criteria_loss + sparsity_loss + neg_weights_penalty


# --------------------------- pure-JAX references ---------------------------
def _ref_cbce(label_out, label, sigmoid):
    o = jax.nn.sigmoid(label_out) if sigmoid else label_out
    o = jnp.clip(o, _EPS, 1.0 - _EPS)
    n_total = label.size
    n_nz = jnp.sum(label != 0.0).astype(jnp.float32)
    alpha = n_nz / n_total
    contour = -label * alpha * jnp.log(o)
    non_contour = (label - 1.0) * (1.0 - alpha) * jnp.log(1.0 - o)
    return jnp.sum(contour + non_contour) / label_out.shape[0]


def _ref_cbce_attn(label_out, label, sigmoid, beta, gamma):
    o = jax.nn.sigmoid(label_out) if sigmoid else label_out
    n_total = label.size
    n_nz = jnp.sum(label != 0.0).astype(jnp.float32)
    alpha = (n_total - n_nz) / n_total
    o = jnp.clip(o, _EPS, 1.0 - _EPS)
    bnd = label * -alpha * beta ** (1.0 - o) ** gamma * jnp.log(o)
    nbnd = (label - 1.0) * (1.0 - alpha) * beta ** o ** gamma * jnp.log(1.0 - o)
    return jnp.sum(bnd + nbnd) / label_out.shape[0]


if __name__ == "__main__":
    key = jax.random.PRNGKey(0)
    k1, k2 = jax.random.split(key)

    # Small edge-detection-like shapes: NCHW = (2, 1, 32, 32)
    N, C, H, W = 2, 1, 32, 32
    label_out = jax.random.normal(k1, (N, C, H, W), dtype=jnp.float32)  # logits
    label = (jax.random.uniform(k2, (N, C, H, W)) > 0.8).astype(jnp.float32)

    # CombinedLoss with ClassBalancedCrossEntropy criterion (requires sigmoid)
    comb_cbce = CombinedLossPallas(
        criterion=ClassBalancedCrossEntropyPallas(), sigmoid_predictions=True)
    loss1 = jax.block_until_ready(comb_cbce(label_out, label))
    ref1 = _ref_cbce(label_out, label, sigmoid=True)

    # CombinedLoss with ClassBalancedCrossEntropyAttentionLoss (DOOBNet)
    comb_attn = CombinedLossPallas(
        criterion=ClassBalancedCrossEntropyAttentionLossPallas(beta=4, gamma=0.5),
        sigmoid_predictions=True)
    loss2 = jax.block_until_ready(comb_attn(label_out, label))
    ref2 = _ref_cbce_attn(label_out, label, sigmoid=True, beta=4.0, gamma=0.5)

    assert jnp.allclose(loss1, ref1, rtol=1e-4, atol=1e-4), (loss1, ref1)
    assert jnp.allclose(loss2, ref2, rtol=1e-4, atol=1e-4), (loss2, ref2)

    # Also exercise an odd-sized (non-128-multiple) tensor to hit the tail-mask path.
    k3, k4 = jax.random.split(k1)
    lo3 = jax.random.normal(k3, (2, 1, 30, 30), dtype=jnp.float32)
    lb3 = (jax.random.uniform(k4, (2, 1, 30, 30)) > 0.8).astype(jnp.float32)
    loss3 = jax.block_until_ready(comb_attn(lo3, lb3))
    ref3 = _ref_cbce_attn(lo3, lb3, sigmoid=True, beta=4.0, gamma=0.5)
    assert jnp.allclose(loss3, ref3, rtol=1e-4, atol=1e-4), (loss3, ref3)

    print("KERNEL_OK")
</pallas_src>

<mosaic_0001>
module attributes {stable_mosaic.version = 11 : i64} {
  func.func @_cb_loss_kernel(%arg0: i32, %arg1: i32, %arg2: memref<16x128xf32, #tpu.memory_space<vmem>>, %arg3: memref<16x128xf32, #tpu.memory_space<vmem>>, %arg4: memref<1x3x8x128xf32, #tpu.memory_space<vmem>>) attributes {dimension_semantics = [#tpu.dimension_semantics<parallel>, #tpu.dimension_semantics<arbitrary>], iteration_bounds = array<i64: 1, 1>, scalar_prefetch = 0 : i64, scratch_operands = 0 : i64, tpu.core_type = #tpu.core_type<tc>, window_params = [{transform_indices = @transform_0, window_bounds = array<i64: 16, 128>}, {transform_indices = @transform_1, window_bounds = array<i64: 16, 128>}, {transform_indices = @transform_2, window_bounds = array<i64: 1, 3, 8, 128>}]} {
    %c0_i32 = arith.constant 0 : i32
    %0 = arith.cmpi eq, %arg1, %c0_i32 : i32
    %1 = arith.extui %0 : i1 to i32
    %c0_i32_0 = arith.constant 0 : i32
    %2 = arith.cmpi ne, %1, %c0_i32_0 : i32
    scf.if %2 {
      %cst_39 = arith.constant 0.000000e+00 : f32
      %60 = vector.broadcast %cst_39 : f32 to vector<1x3x8x128xf32>
      %c0_40 = arith.constant 0 : index
      %c0_41 = arith.constant 0 : index
      %c0_42 = arith.constant 0 : index
      %c0_43 = arith.constant 0 : index
      %61 = vector.load %arg4[%c0_40, %c0_41, %c0_42, %c0_43] : memref<1x3x8x128xf32, #tpu.memory_space<vmem>>, vector<1x3x8x128xf32>
      tpu.vector_store %arg4[%c0_40, %c0_41, %c0_42, %c0_43], %60 {strides = array<i32>} : memref<1x3x8x128xf32, #tpu.memory_space<vmem>>, vector<1x3x8x128xf32>,
    } else {
    }
    %c0 = arith.constant 0 : index
    %c0_1 = arith.constant 0 : index
    %3 = vector.load %arg2[%c0, %c0_1] : memref<16x128xf32, #tpu.memory_space<vmem>>, vector<16x128xf32>
    %c0_2 = arith.constant 0 : index
    %c0_3 = arith.constant 0 : index
    %4 = vector.load %arg3[%c0_2, %c0_3] : memref<16x128xf32, #tpu.memory_space<vmem>>, vector<16x128xf32>
    %5 = math.absf %3 : vector<16x128xf32>
    %cst = arith.constant 0.000000e+00 : f32
    %6 = vector.broadcast %cst : f32 to vector<16x128xf32>
    %7 = arith.subf %6, %5 : vector<16x128xf32>
    %8 = math.exp %7 : vector<16x128xf32>
    %9 = math.log1p %8 : vector<16x128xf32>
    %cst_4 = arith.constant 0.000000e+00 : f32
    %10 = vector.broadcast %cst_4 : f32 to vector<16x128xf32>
    %11 = arith.minimumf %3, %10 : vector<16x128xf32>
    %12 = arith.subf %11, %9 : vector<16x128xf32>
    %cst_5 = arith.constant -13.8155107 : f32
    %cst_6 = arith.constant -1.00000045E-6 : f32
    %13 = vector.broadcast %cst_5 : f32 to vector<16x128xf32>
    %14 = arith.maximumf %13, %12 : vector<16x128xf32>
    %15 = vector.broadcast %cst_6 : f32 to vector<16x128xf32>
    %16 = arith.minimumf %15, %14 : vector<16x128xf32>
    %cst_7 = arith.constant 0.000000e+00 : f32
    %17 = vector.broadcast %cst_7 : f32 to vector<16x128xf32>
    %18 = arith.maximumf %3, %17 : vector<16x128xf32>
    %cst_8 = arith.constant 0.000000e+00 : f32
    %19 = vector.broadcast %cst_8 : f32 to vector<16x128xf32>
    %20 = arith.subf %19, %18 : vector<16x128xf32>
    %21 = arith.subf %20, %9 : vector<16x128xf32>
    %cst_9 = arith.constant -13.8155107 : f32
    %cst_10 = arith.constant -1.00000045E-6 : f32
    %22 = vector.broadcast %cst_9 : f32 to vector<16x128xf32>
    %23 = arith.maximumf %22, %21 : vector<16x128xf32>
    %24 = vector.broadcast %cst_10 : f32 to vector<16x128xf32>
    %25 = arith.minimumf %24, %23 : vector<16x128xf32>
    %cst_11 = arith.constant 0.000000e+00 : f32
    %26 = vector.broadcast %cst_11 : f32 to vector<16x128xf32>
    %27 = arith.subf %26, %4 : vector<16x128xf32>
    %28 = arith.mulf %27, %16 : vector<16x128xf32>
    %cst_12 = arith.constant 1.000000e+00 : f32
    %29 = vector.broadcast %cst_12 : f32 to vector<16x128xf32>
    %30 = arith.subf %4, %29 : vector<16x128xf32>
    %31 = arith.mulf %30, %25 : vector<16x128xf32>
    %cst_13 = arith.constant 0.000000e+00 : f32
    %32 = vector.broadcast %cst_13 : f32 to vector<16x128xf32>
    %33 = arith.cmpf one, %4, %32 : vector<16x128xf32>
    %34 = arith.extui %33 : vector<16x128xi1> to vector<16x128xi32>
    %35 = arith.sitofp %34 : vector<16x128xi32> to vector<16x128xf32>
    %c0_14 = arith.constant 0 : index
    %c0_15 = arith.constant 0 : index
    %c0_16 = arith.constant 0 : index
    %c0_17 = arith.constant 0 : index
    %36 = vector.load %arg4[%c0_14, %c0_15, %c0_16, %c0_17] : memref<1x3x8x128xf32, #tpu.memory_space<vmem>>, vector<1x1x8x128xf32>
    %37 = vector.shape_cast %36 : vector<1x1x8x128xf32> to vector<8x128xf32>
    %38 = vector.shape_cast %35 : vector<16x128xf32> to vector<2x8x128xf32>
    %cst_18 = arith.constant dense<0.000000e+00> : vector<8x128xf32>
    %39 = vector.multi_reduction <add>, %38, %cst_18 [0] : vector<2x8x128xf32> to vector<8x128xf32>
    %40 = arith.addf %37, %39 : vector<8x128xf32>
    %c0_19 = arith.constant 0 : index
    %c0_20 = arith.constant 0 : index
    %c0_21 = arith.constant 0 : index
    %c0_22 = arith.constant 0 : index
    %41 = vector.load %arg4[%c0_19, %c0_20, %c0_21, %c0_22] : memref<1x3x8x128xf32, #tpu.memory_space<vmem>>, vector<1x1x8x128xf32>
    %42 = vector.shape_cast %41 : vector<1x1x8x128xf32> to vector<8x128xf32>
    %43 = vector.shape_cast %40 : vector<8x128xf32> to vector<1x1x8x128xf32>
    tpu.vector_store %arg4[%c0_19, %c0_20, %c0_21, %c0_22], %43 {strides = array<i32>} : memref<1x3x8x128xf32, #tpu.memory_space<vmem>>, vector<1x1x8x128xf32>,
    %c0_23 = arith.constant 0 : index
    %c1 = arith.constant 1 : index
    %c0_24 = arith.constant 0 : index
    %c0_25 = arith.constant 0 : index
    %44 = vector.load %arg4[%c0_23, %c1, %c0_24, %c0_25] : memref<1x3x8x128xf32, #tpu.memory_space<vmem>>, vector<1x1x8x128xf32>
    %45 = vector.shape_cast %44 : vector<1x1x8x128xf32> to vector<8x128xf32>
    %46 = vector.shape_cast %28 : vector<16x128xf32> to vector<2x8x128xf32>
    %cst_26 = arith.constant dense<0.000000e+00> : vector<8x128xf32>
    %47 = vector.multi_reduction <add>, %46, %cst_26 [0] : vector<2x8x128xf32> to vector<8x128xf32>
    %48 = arith.addf %45, %47 : vector<8x128xf32>
    %c0_27 = arith.constant 0 : index
    %c1_28 = arith.constant 1 : index
    %c0_29 = arith.constant 0 : index
    %c0_30 = arith.constant 0 : index
    %49 = vector.load %arg4[%c0_27, %c1_28, %c0_29, %c0_30] : memref<1x3x8x128xf32, #tpu.memory_space<vmem>>, vector<1x1x8x128xf32>
    %50 = vector.shape_cast %49 : vector<1x1x8x128xf32> to vector<8x128xf32>
    %51 = vector.shape_cast %48 : vector<8x128xf32> to vector<1x1x8x128xf32>
    tpu.vector_store %arg4[%c0_27, %c1_28, %c0_29, %c0_30], %51 {strides = array<i32>} : memref<1x3x8x128xf32, #tpu.memory_space<vmem>>, vector<1x1x8x128xf32>,
    %c0_31 = arith.constant 0 : index
    %c2 = arith.constant 2 : index
    %c0_32 = arith.constant 0 : index
    %c0_33 = arith.constant 0 : index
    %52 = vector.load %arg4[%c0_31, %c2, %c0_32, %c0_33] : memref<1x3x8x128xf32, #tpu.memory_space<vmem>>, vector<1x1x8x128xf32>
    %53 = vector.shape_cast %52 : vector<1x1x8x128xf32> to vector<8x128xf32>
    %54 = vector.shape_cast %31 : vector<16x128xf32> to vector<2x8x128xf32>
    %cst_34 = arith.constant dense<0.000000e+00> : vector<8x128xf32>
    %55 = vector.multi_reduction <add>, %54, %cst_34 [0] : vector<2x8x128xf32> to vector<8x128xf32>
    %56 = arith.addf %53, %55 : vector<8x128xf32>
    %c0_35 = arith.constant 0 : index
    %c2_36 = arith.constant 2 : index
    %c0_37 = arith.constant 0 : index
    %c0_38 = arith.constant 0 : index
    %57 = vector.load %arg4[%c0_35, %c2_36, %c0_37, %c0_38] : memref<1x3x8x128xf32, #tpu.memory_space<vmem>>, vector<1x1x8x128xf32>
    %58 = vector.shape_cast %57 : vector<1x1x8x128xf32> to vector<8x128xf32>
    %59 = vector.shape_cast %56 : vector<8x128xf32> to vector<1x1x8x128xf32>
    tpu.vector_store %arg4[%c0_35, %c2_36, %c0_37, %c0_38], %59 {strides = array<i32>} : memref<1x3x8x128xf32, #tpu.memory_space<vmem>>, vector<1x1x8x128xf32>,
    return
  }
  func.func @transform_0(%arg0: i32, %arg1: i32) -> (i32, i32) {
    %c1_i32 = arith.constant 1 : i32
    %0 = arith.muli %arg0, %c1_i32 : i32
    %1 = arith.addi %0, %arg1 : i32
    %c0_i32 = arith.constant 0 : i32
    %c0_i32_0 = arith.constant 0 : i32
    return %1, %c0_i32 : i32, i32
  }
  func.func @transform_1(%arg0: i32, %arg1: i32) -> (i32, i32) {
    %c1_i32 = arith.constant 1 : i32
    %0 = arith.muli %arg0, %c1_i32 : i32
    %1 = arith.addi %0, %arg1 : i32
    %c0_i32 = arith.constant 0 : i32
    %c0_i32_0 = arith.constant 0 : i32
    return %1, %c0_i32 : i32, i32
  }
  func.func @transform_2(%arg0: i32, %arg1: i32) -> (i32, i32, i32, i32) {
    %c0_i32 = arith.constant 0 : i32
    %c0_i32_0 = arith.constant 0 : i32
    %c0_i32_1 = arith.constant 0 : i32
    %c0_i32_2 = arith.constant 0 : i32
    return %arg0, %c0_i32, %c0_i32_0, %c0_i32_1 : i32, i32, i32, i32
  }
}

</mosaic_0001>

<bundles_post_ra>
// kernel: tpu_custom_call.1
= control target key start
LH: loop header
LB: loop body
LE: loop exit
PB: predicated region body
PF: predicated region fallthrough
CT: control target
= control target key end

     0   :  { %7 = vsyncpa [#allocation3], 0  ;;  %s319_s0 = inlined_call_operand.hbm [shape: f32[16,128], index: 0, kind: input, shape index: {}]   ;;  %s320_s1 = inlined_call_operand.hbm [shape: f32[16,128], index: 1, kind: input, shape index: {}]   ;;  %s321_s2 = inlined_call_operand.hbm [shape: f32[1,3,8,128], index: 2, kind: output, shape index: {}]  }
   0x1   :  { %8 = vsyncpa [#allocation6], 0 }
   0x2   :  { %9 = vsyncpa [#allocation4], 0  ;;  %s243_s9 = smov [#allocation2]   ;;  %s171_s13 = scalar_lea.hbm %s319_s0, 256 }
   0x3   :  { %s19_s10 = sshll.u32 %s243_s9, 4  ;;  %p172_p0 = scmp.ne.s32.totalorder %s319_s0, %s171_s13  ;;  %s20_s10 = int_to_ptr.vmem [resolvable:$true] %s19_s10 }
   0x4   :  { %p175_p1 = scmp.lt.u32.totalorder %s171_s13, %s319_s0 }
   0x6   :  { %p177_p2 = pnand %p175_p1, %p172_p0 }
   0x8   :  { %180 = shalt.err (!%p177_p2)
}
   0x9   :  { %s181_s18 = scalar_lea.vmem %s20_s10, 256  ;;  %p186_p4 = scmp.lt.s32.totalorder %s20_s10, %s20_s10 }
   0xa   :  { %p182_p3 = scmp.ne.s32.totalorder %s20_s10, %s181_s18  ;;  %p187_p5 = scmp.lt.s32.totalorder %s181_s18, %s181_s18 }
   0xc   :  { %p188_p6 = por %p187_p5, %p186_p4 }
   0xe   :  { %p189_p7 = pnand %p188_p6, %p182_p3 }
  0x10   :  { %192 = shalt.err (!%p189_p7)
}
  0x11   :  { %s244_s19 = smov 128   ;;  %s245_s20 = smov 8  }
  0x12   :  { %25 = dma.hbm_to_vmem [thread:$0]  %s319_s0, 256, %s20_s10, [#allocation3], %s244_s19, %s244_s19, %s245_s20  }
  0x13   :  { %s246_s23 = smov [#allocation5]   ;;  %s193_s27 = scalar_lea.hbm %s320_s1, 256 }
  0x14   :  { %s35_s24 = sshll.u32 %s246_s23, 4  ;;  %p194_p8 = scmp.ne.s32.totalorder %s320_s1, %s193_s27  ;;  %s36_s24 = int_to_ptr.vmem [resolvable:$true] %s35_s24 }
  0x15   :  { %p197_p9 = scmp.lt.u32.totalorder %s193_s27, %s320_s1 }
  0x17   :  { %p199_p10 = pnand %p197_p9, %p194_p8 }
  0x19   :  { %202 = shalt.err (!%p199_p10)
}
  0x1a   :  { %s203_s4 = scalar_lea.vmem %s36_s24, 256  ;;  %p208_p12 = scmp.lt.s32.totalorder %s36_s24, %s36_s24 }
  0x1b   :  { %p204_p11 = scmp.ne.s32.totalorder %s36_s24, %s203_s4  ;;  %p209_p13 = scmp.lt.s32.totalorder %s203_s4, %s203_s4 }
  0x1d   :  { %p210_p0 = por %p209_p13, %p208_p12 }
  0x1f   :  { %p211_p1 = pnand %p210_p0, %p204_p11 }
  0x21   :  { %214 = shalt.err (!%p211_p1)
}
  0x22   :  { %41 = dma.hbm_to_vmem [thread:$0]  %s320_s1, 256, %s36_s24, [#allocation6], %s244_s19, %s244_s19, %s245_s20  }
  0x23   :  { %237 = dma.done.wait [#allocation3], 256  }
  0x24   :  { %238 = vsyncadd [#allocation3], 4294967040 }
  0x25   :  { %239 = dma.done.wait [#allocation6], 256  }
  0x26   :  { %240 = vsyncadd [#allocation6], 4294967040  ;;  %v294_v0 = vld [vmem:[#allocation5] sm:$0xff]  ;;  %v296_v1 = vld [vmem:[#allocation5 + $0x8] sm:$0xff]  ;;  %v247_v5 = vmov 0.0   ;;  %s248_s1 = smov [#allocation7]  }
  0x27   :  { %v59_v2 = vld [vmem:[#allocation2] sm:$0xff]  ;;  %vm115_vm0 = vcmp.ne.f32.partialorder %v294_v0, 0.0  ;;  %vm116_vm1 = vcmp.ne.f32.partialorder %v296_v1, 0.0  ;;  %v60_v3 = vld [vmem:[#allocation2 + $0x8] sm:$0xff]  ;;  %v107_v43 = vsub.f32 0.0, %v294_v0  ;;  %v153_v45 = vadd.f32 -1.0, %v294_v0 }
  0x28   :  { %v63_v4 = vand.u32 2147483647, %v59_v2  ;;  %v155_v6 = vsel %vm115_vm0, 1.0, %v247_v5  ;;  %v156_v7 = vsel %vm116_vm1, 1.0, %v247_v5  ;;  %v64_v8 = vand.u32 2147483647, %v60_v3 }
  0x29   :  { %v122_v9 = vadd.f32 %v156_v7, %v155_v6  ;;  %v97_v23 = vmax.f32 %v59_v2, 0.0  ;;  %v98_v25 = vmax.f32 %v60_v3, 0.0  ;;  %v89_v29 = vmin.f32 %v59_v2, 0.0  ;;  %s140_s6 = sshll.u32 %s248_s1, 4  ;;  %s141_s6 = int_to_ptr.vmem [resolvable:$true] %s140_s6 }
  0x2a   :  { %v65_v10 = vsub.f32 0.0, %v63_v4  ;;  %v66_v11 = vsub.f32 0.0, %v64_v8  ;;  %v90_v33 = vmin.f32 %v60_v3, 0.0  ;;  %v108_v47 = vsub.f32 0.0, %v296_v1  ;;  %s215_s7 = scalar_lea.vmem %s141_s6, 384  ;;  %p220_p3 = scmp.lt.s32.totalorder %s141_s6, %s141_s6 }
  0x2b   :  { %124 = vst [vmem:[#allocation7] sm:$0xff] %v122_v9  ;;  %v99_v30 = vsub.f32 0.0, %v97_v23  ;;  %v100_v34 = vsub.f32 0.0, %v98_v25  ;;  %v154_v49 = vadd.f32 -1.0, %v296_v1  ;;  %p216_p2 = scmp.ne.s32.totalorder %s141_s6, %s215_s7  ;;  %p221_p4 = scmp.lt.s32.totalorder %s215_s7, %s215_s7 }
  0x2c   :  { %v67_v12 = vmul.f32 1.442695, %v65_v10  ;;  %v69_v13 = vmul.f32 1.442695, %v66_v11 }
  0x2d   :  { %p222_p5 = por %p221_p4, %p220_p3 }
  0x2e   :  { %163 = vpow2.f32 %v67_v12 }
  0x2f   :  { %165 = vpow2.f32 %v69_v13  ;;  %p223_p6 = pnand %p222_p5, %p216_p2 }
  0x38   :  { %v164_v14 = vpop.eup %163 }
  0x39   :  { %v166_v15 = vpop.eup %165  ;;  %v71_v16 = vadd.f32 1.0, %v164_v14  ;;  %v74_v18 = vmul.f32 -0.5, %v164_v14  ;;  %v77_v21 = vand.u32 2147483647, %v164_v14 }
  0x3a   :  { %v80_v17 = vadd.f32 1.0, %v166_v15  ;;  %v83_v19 = vmul.f32 -0.5, %v166_v15  ;;  %v86_v24 = vand.u32 2147483647, %v166_v15 }
  0x3b   :  { %167 = vlog2.f32 %v71_v16  ;;  %v75_v20 = vadd.f32 1.0, %v74_v18  ;;  %vm78_vm2 = vcmp.lt.f32.partialorder %v77_v21, 0.0004427343 }
  0x3c   :  { %169 = vlog2.f32 %v80_v17  ;;  %v84_v22 = vadd.f32 1.0, %v83_v19  ;;  %vm87_vm3 = vcmp.lt.f32.partialorder %v86_v24, 0.0004427343 }
  0x3d   :  { %v76_v26 = vmul.f32 %v164_v14, %v75_v20 }
  0x3e   :  { %v85_v28 = vmul.f32 %v166_v15, %v84_v22 }
  0x45   :  { %v168_v27 = vpop.eup %167 }
  0x46   :  { %v170_v31 = vpop.eup %169  ;;  %v73_v32 = vmul.f32 0.6931472, %v168_v27 }
  0x47   :  { %v82_v35 = vmul.f32 0.6931472, %v170_v31 }
  0x48   :  { %v79_v36 = vsel %vm78_vm2, %v76_v26, %v73_v32 }
  0x49   :  { %v88_v37 = vsel %vm87_vm3, %v85_v28, %v82_v35  ;;  %v91_v38 = vsub.f32 %v89_v29, %v79_v36  ;;  %v101_v39 = vsub.f32 %v99_v30, %v79_v36 }
  0x4a   :  { %v92_v40 = vsub.f32 %v90_v33, %v88_v37  ;;  %v102_v41 = vsub.f32 %v100_v34, %v88_v37 }
  0x4b   :  { %v93_v42 = vmax.f32 %v91_v38, -13.815511  ;;  %v103_v44 = vmax.f32 %v101_v39, -13.815511 }
  0x4c   :  { %v94_v46 = vmax.f32 %v92_v40, -13.815511  ;;  %v104_v48 = vmax.f32 %v102_v41, -13.815511 }
  0x4d   :  { %v95_v50 = vmin.f32 %v93_v42, -1.0000005e-06  ;;  %v105_v51 = vmin.f32 %v103_v44, -1.0000005e-06 }
  0x4e   :  { %v96_v52 = vmin.f32 %v94_v46, -1.0000005e-06  ;;  %v106_v53 = vmin.f32 %v104_v48, -1.0000005e-06 }
  0x4f   :  { %v109_v54 = vmul.f32 %v107_v43, %v95_v50  ;;  %v113_v55 = vmul.f32 %v153_v45, %v105_v51 }
  0x50   :  { %v110_v56 = vmul.f32 %v108_v47, %v96_v52  ;;  %v114_v57 = vmul.f32 %v154_v49, %v106_v53 }
  0x52   :  { %v127_v58 = vadd.f32 %v110_v56, %v109_v54  ;;  %v132_v59 = vadd.f32 %v114_v57, %v113_v55 }
  0x54   :  { %129 = vst [vmem:[#allocation7 + $0x8] sm:$0xff] %v127_v58  ;;  %134 = vst [vmem:[#allocation7 + $0x10] sm:$0xff] %v132_v59 }
  0x55   :  { %226 = shalt.err (!%p223_p6)
}
  0x56   :  { %s227_s10 = scalar_lea.hbm %s321_s2, 384 }
  0x57   :  { %p228_p7 = scmp.ne.s32.totalorder %s321_s2, %s227_s10  ;;  %p231_p8 = scmp.lt.u32.totalorder %s227_s10, %s321_s2 }
  0x59   :  { %p233_p9 = pnand %p231_p8, %p228_p7 }
  0x5b   :  { %236 = shalt.err (!%p233_p9)
}
  0x5c   :  { %146 = dma.vmem_to_hbm [thread:$0]  %s141_s6, 384, %s321_s2, [#allocation4], %s244_s19, %s244_s19, %s245_s20  }
  0x5d   :  { %241 = dma.done.wait [#allocation4], 384  }
  0x5e   :  { %242 = vsyncadd [#allocation4], 4294966912 }
  0x5f   :  { %150 = vsyncpa [#allocation3], 1 }
  0x60   :  { %151 = vsyncpa [#allocation6], 1 }
  0x61   :  { %152 = vsyncpa [#allocation4], 1 }

</bundles_post_ra>
